<compile_context>
chip_gen: v7x
topology: tpu7x:2x2x1
jax: 0.10.0
libtpu: 0.0.40
codegen_flags: <defaults>
</compile_context>

<pallas_src>
import jax
import jax.numpy as jnp
from jax.experimental import pallas as pl
from jax.experimental.pallas import tpu as pltpu


_LANES = 512                             # lane-dense last dim (multiple of 128)
_TARGET_BLOCK_BYTES = 4 * 1024 * 1024    # ~4 MiB per pipelined block
_VMEM_LIMIT_BYTES = 32 * 1024 * 1024     # 2-in + 2-out 4 MiB buffers << 32 MiB


def _fused_kernel(x_ref, o_ref):
    # Literal chain: ((x + 2) * 3 - 1) / 4 + 0 + 1
    #  - integer dtypes stay integer until the division (torch semantics)
    #  - '/ 4' is an exact power-of-two scale -> multiply by 0.25
    #  - '+ 0' is a bitwise no-op for floats, so it is dropped
    v = x_ref[...]
    v = (v + 2) * 3 - 1
    v = v.astype(o_ref.dtype) * 0.25
    o_ref[...] = (v + 1).astype(o_ref.dtype)


def _choose_tile(rows, smult, tile_itemsize):
    """Pick (row_tile, grid_n) for a (rows, _LANES) slab."""
    if rows <= 2 * smult:
        # Tiny tensor: a single block whose dims equal the full array dims is
        # always layout-legal, and per-step overhead dominates anyway.
        return rows, 1
    # ~4 MiB blocks, but keep >= 4 grid steps when there is enough work so the
    # double-buffered pipeline overlaps input and output DMA and both v7x
    # TensorCores participate via the "parallel" axis.
    target_rows = max(
        smult, (_TARGET_BLOCK_BYTES // (_LANES * tile_itemsize)) // smult * smult
    )
    quarter = max(smult, (rows // 4) // smult * smult)
    row_tile = min(target_rows, quarter)
    return row_tile, pl.cdiv(rows, row_tile)


def _call(x2, out_dtype, row_tile, grid_n, alias_input):
    in_bytes = x2.size * x2.dtype.itemsize
    out_bytes = x2.size * jnp.dtype(out_dtype).itemsize
    kwargs = {}
    if alias_input:
        # Only valid when the caller donates the (un-padded) input buffer and
        # dtypes match; removes the separate output allocation in HBM.
        kwargs["input_output_aliases"] = {0: 0}
    return pl.pallas_call(
        _fused_kernel,
        out_shape=jax.ShapeDtypeStruct(x2.shape, out_dtype),
        grid_spec=pltpu.PrefetchScalarGridSpec(
            num_scalar_prefetch=0,
            grid=(grid_n,),
            in_specs=[pl.BlockSpec((row_tile, _LANES), lambda i: (i, 0))],
            out_specs=pl.BlockSpec((row_tile, _LANES), lambda i: (i, 0)),
        ),
        compiler_params=pltpu.CompilerParams(
            dimension_semantics=("parallel",),
            vmem_limit_bytes=_VMEM_LIMIT_BYTES,
        ),
        cost_estimate=pl.CostEstimate(
            flops=4 * x2.size,
            transcendentals=0,
            bytes_accessed=in_bytes + out_bytes,
        ),
        **kwargs,
    )(x2)


def pt_module_forward(x, donate_input=False):
    """PtModule.forward as a single fused, lane-dense Pallas TPU kernel.

    Set donate_input=True only when the caller donates `x` (same dtype and a
    lane-aligned element count) so the output may alias the input HBM buffer.
    """
    orig_shape = x.shape
    in_dtype = x.dtype
    # torch.div is true division -> integer inputs promote to float32.
    out_dtype = in_dtype if jnp.issubdtype(in_dtype, jnp.floating) else jnp.float32
    in_itemsize = jnp.dtype(in_dtype).itemsize
    tile_itemsize = max(in_itemsize, jnp.dtype(out_dtype).itemsize)
    smult = max(8, 32 // in_itemsize)  # sublane packing multiple for the input

    total = int(x.size)
    if total == 0:
        return jnp.zeros(orig_shape, out_dtype)

    flat = x.reshape(-1)

    if total % _LANES == 0:
        # Fast path: no pad, no output slice -> zero extra HBM traffic.
        rows = total // _LANES
        row_tile, grid_n = _choose_tile(rows, smult, tile_itemsize)
        x2 = flat.reshape(rows, _LANES)
        alias = bool(donate_input) and out_dtype == in_dtype
        out2 = _call(x2, out_dtype, row_tile, grid_n, alias)
        return out2.reshape(orig_shape)

    # Ragged fallback: pad the tail up to a full lane row (partial row blocks
    # along the grid axis are handled by Pallas itself).
    # TODO(synk): replace this pad/slice round-trip with an in-kernel masked
    # store of the ragged tail (scalar-prefetched bound) to avoid the extra
    # HBM copy for unaligned shapes.
    rows = pl.cdiv(total, _LANES)
    row_tile, grid_n = _choose_tile(rows, smult, tile_itemsize)
    padded_total = rows * _LANES
    flat = jnp.pad(flat, (0, padded_total - total))
    x2 = flat.reshape(rows, _LANES)
    out2 = _call(x2, out_dtype, row_tile, grid_n, alias_input=False)
    return out2.reshape(-1)[:total].reshape(orig_shape)


def _reference(x):
    x = x + 2
    x = x * 3
    x = x - 1
    x = x / 4
    for i in range(2):
        x = x + i
    return x


if __name__ == "__main__":
    key = jax.random.PRNGKey(0)
    # Small shapes consistent with the elementwise forward, covering the
    # single-block, multi-block, partial-last-block and ragged paths.
    shapes = [
        (2, 4, 16, 16),   # 2048 elems  -> lane-aligned, single-block fast path
        (4, 3, 32, 32),   # 12288 elems -> lane-aligned, multi-block fast path
        (4, 5, 512),      # 10240 elems -> lane-aligned, partial last block
        (2, 3, 5, 7),     # 210 elems   -> ragged pad fallback
    ]
    ok = True
    for i, shape in enumerate(shapes):
        k = jax.random.fold_in(key, i)
        x = jax.random.normal(k, shape, dtype=jnp.float32)
        y = jax.block_until_ready(pt_module_forward(x))
        y_ref = _reference(x)
        ok = ok and (y.shape == x.shape)
        ok = ok and (y.dtype == y_ref.dtype)
        ok = ok and bool(jnp.allclose(y, y_ref, atol=1e-5, rtol=1e-6))
    assert ok
    print("KERNEL_OK")
</pallas_src>

<mosaic_0001>
module attributes {stable_mosaic.version = 11 : i64} {
  func.func @_fused_kernel(%arg0: i32, %arg1: memref<4x512xf32, #tpu.memory_space<vmem>>, %arg2: memref<4x512xf32, #tpu.memory_space<vmem>>) attributes {dimension_semantics = [#tpu.dimension_semantics<parallel>], iteration_bounds = array<i64: 1>, scalar_prefetch = 0 : i64, scratch_operands = 0 : i64, tpu.core_type = #tpu.core_type<tc>, window_params = [{transform_indices = @transform_0, window_bounds = array<i64: 4, 512>}, {transform_indices = @transform_1, window_bounds = array<i64: 4, 512>}]} {
    %c0 = arith.constant 0 : index
    %c0_0 = arith.constant 0 : index
    %0 = vector.load %arg1[%c0, %c0_0] : memref<4x512xf32, #tpu.memory_space<vmem>>, vector<4x512xf32>
    %cst = arith.constant 2.000000e+00 : f32
    %1 = vector.broadcast %cst : f32 to vector<4x512xf32>
    %2 = arith.addf %0, %1 : vector<4x512xf32>
    %cst_1 = arith.constant 3.000000e+00 : f32
    %3 = vector.broadcast %cst_1 : f32 to vector<4x512xf32>
    %4 = arith.mulf %2, %3 : vector<4x512xf32>
    %cst_2 = arith.constant 1.000000e+00 : f32
    %5 = vector.broadcast %cst_2 : f32 to vector<4x512xf32>
    %6 = arith.subf %4, %5 : vector<4x512xf32>
    %cst_3 = arith.constant 2.500000e-01 : f32
    %7 = vector.broadcast %cst_3 : f32 to vector<4x512xf32>
    %8 = arith.mulf %6, %7 : vector<4x512xf32>
    %cst_4 = arith.constant 1.000000e+00 : f32
    %9 = vector.broadcast %cst_4 : f32 to vector<4x512xf32>
    %10 = arith.addf %8, %9 : vector<4x512xf32>
    %c0_5 = arith.constant 0 : index
    %c0_6 = arith.constant 0 : index
    %11 = vector.load %arg2[%c0_5, %c0_6] : memref<4x512xf32, #tpu.memory_space<vmem>>, vector<4x512xf32>
    tpu.vector_store %arg2[%c0_5, %c0_6], %10 {strides = array<i32>} : memref<4x512xf32, #tpu.memory_space<vmem>>, vector<4x512xf32>,
    return
  }
  func.func @transform_0(%arg0: i32) -> (i32, i32) {
    %c0_i32 = arith.constant 0 : i32
    %c0_i32_0 = arith.constant 0 : i32
    return %arg0, %c0_i32 : i32, i32
  }
  func.func @transform_1(%arg0: i32) -> (i32, i32) {
    %c0_i32 = arith.constant 0 : i32
    %c0_i32_0 = arith.constant 0 : i32
    return %arg0, %c0_i32 : i32, i32
  }
}

</mosaic_0001>

<bundles_post_ra>
// kernel: tpu_custom_call.1
= control target key start
LH: loop header
LB: loop body
LE: loop exit
PB: predicated region body
PF: predicated region fallthrough
CT: control target
= control target key end

     0   :  { %6 = vsyncpa [#allocation3], 0  ;;  %s138_s0 = inlined_call_operand.hbm [shape: f32[4,512], index: 0, kind: input, shape index: {}]   ;;  %s139_s1 = inlined_call_operand.hbm [shape: f32[4,512], index: 1, kind: output, shape index: {}]  }
   0x1   :  { %7 = vsyncpa [#allocation4], 0  ;;  %s102_s6 = smov [#allocation2]   ;;  %s54_s10 = scalar_lea.hbm %s138_s0, 256 }
   0x2   :  { %s14_s7 = sshll.u32 %s102_s6, 4  ;;  %p55_p0 = scmp.ne.s32.totalorder %s138_s0, %s54_s10  ;;  %s15_s7 = int_to_ptr.vmem [resolvable:$true] %s14_s7 }
   0x3   :  { %p58_p1 = scmp.lt.u32.totalorder %s54_s10, %s138_s0 }
   0x5   :  { %p60_p2 = pnand %p58_p1, %p55_p0 }
   0x7   :  { %63 = shalt.err (!%p60_p2)
}
   0x8   :  { %s64_s15 = scalar_lea.vmem %s15_s7, 256  ;;  %p69_p4 = scmp.lt.s32.totalorder %s15_s7, %s15_s7 }
   0x9   :  { %p65_p3 = scmp.ne.s32.totalorder %s15_s7, %s64_s15  ;;  %p70_p5 = scmp.lt.s32.totalorder %s64_s15, %s64_s15 }
   0xb   :  { %p71_p6 = por %p70_p5, %p69_p4 }
   0xd   :  { %p72_p7 = pnand %p71_p6, %p65_p3 }
   0xf   :  { %75 = shalt.err (!%p72_p7)
}
  0x10   :  { %17 = dma.hbm_to_vmem [thread:$0]  %s138_s0, 256, %s15_s7, [#allocation3]  }
  0x11   :  { %98 = dma.done.wait [#allocation3], 256  }
  0x12   :  { %99 = vsyncadd [#allocation3], 4294967040  ;;  %v21_v0 = vld [vmem:[#allocation2] sm:$0xff]  ;;  %v22_v1 = vld [vmem:[#allocation2 + $0x8] sm:$0xff]  ;;  %s103_s18 = smov [#allocation5]  }
  0x13   :  { %v23_v2 = vadd.f32 2.0, %v21_v0  ;;  %v24_v3 = vadd.f32 2.0, %v22_v1  ;;  %s41_s19 = sshll.u32 %s103_s18, 4  ;;  %s42_s19 = int_to_ptr.vmem [resolvable:$true] %s41_s19 }
  0x14   :  { %s76_s0 = scalar_lea.vmem %s42_s19, 256  ;;  %p81_p9 = scmp.lt.s32.totalorder %s42_s19, %s42_s19 }
  0x15   :  { %v25_v4 = vmul.f32 3.0, %v23_v2  ;;  %v26_v5 = vmul.f32 3.0, %v24_v3  ;;  %p77_p8 = scmp.ne.s32.totalorder %s42_s19, %s76_s0  ;;  %p82_p10 = scmp.lt.s32.totalorder %s76_s0, %s76_s0 }
  0x17   :  { %v50_v6 = vadd.f32 -1.0, %v25_v4  ;;  %v51_v7 = vadd.f32 -1.0, %v26_v5  ;;  %p83_p11 = por %p82_p10, %p81_p9 }
  0x19   :  { %v29_v8 = vmul.f32 0.25, %v50_v6  ;;  %v30_v9 = vmul.f32 0.25, %v51_v7  ;;  %p84_p12 = pnand %p83_p11, %p77_p8 }
  0x1b   :  { %v31_v10 = vadd.f32 1.0, %v29_v8  ;;  %v32_v11 = vadd.f32 1.0, %v30_v9 }
  0x1d   :  { %33 = vst [vmem:[#allocation5] sm:$0xff] %v31_v10  ;;  %34 = vst [vmem:[#allocation5 + $0x8] sm:$0xff] %v32_v11 }
  0x1e   :  { %87 = shalt.err (!%p84_p12)
}
  0x1f   :  { %s88_s22 = scalar_lea.hbm %s139_s1, 256 }
  0x20   :  { %p89_p13 = scmp.ne.s32.totalorder %s139_s1, %s88_s22  ;;  %p92_p0 = scmp.lt.u32.totalorder %s88_s22, %s139_s1 }
  0x22   :  { %p94_p1 = pnand %p92_p0, %p89_p13 }
  0x24   :  { %97 = shalt.err (!%p94_p1)
}
  0x25   :  { %44 = dma.vmem_to_hbm [thread:$0]  %s42_s19, 256, %s139_s1, [#allocation4]  }
  0x26   :  { %100 = dma.done.wait [#allocation4], 256  }
  0x27   :  { %101 = vsyncadd [#allocation4], 4294967040 }
  0x28   :  { %48 = vsyncpa [#allocation3], 1 }
  0x29   :  { %49 = vsyncpa [#allocation4], 1 }

</bundles_post_ra>
